<compile_context>
chip_gen: v7x
topology: tpu7x:2x2x1
jax: 0.10.0
libtpu: 0.0.40
codegen_flags: <defaults>
</compile_context>

<pallas_src>
import functools

import jax
import jax.numpy as jnp
from jax.experimental import pallas as pl
from jax.experimental.pallas import tpu as pltpu

LANE = 128     # lane width (last dim granule)
SUBLANE = 8    # f32 sublane granule (second-to-last dim)


def _round_up(n, m):
    return ((n + m - 1) // m) * m


def _padded_dims(input_size, hidden_size, output_size):
    C = input_size + hidden_size
    return (_round_up(input_size, LANE), _round_up(hidden_size, LANE),
            _round_up(output_size, LANE), _round_up(C, LANE))


def _rnn_kernel(
    x_ref,                 # [1, Bp, Ip]   x_t, streamed per grid step
    h0_ref,                # [Bp, Hp]      initial hidden (read at t == 0)
    wxc_ref, whc_ref, bc_ref,   # c2c split: [Ip, Cp], [Hp, Cp], [1, Cp]
    wih_ref, bih_ref,           # i2h: [Cp, Hp], [1, Hp]
    whh_ref, bhh_ref,           # h2h: [Hp, Hp], [1, Hp]
    wio_ref, bio_ref,           # i2o: [Cp, Op], [1, Op]
    woo_ref, boo_ref,           # o2o: [Op, Op], [1, Op]
    slab_ref,              # [1, Bp, Op + Hp]  merged (output | hidden) slab
    h_scr,                 # VMEM scratch [Bp, Hp]: hidden carried across steps
    *, o_pad,
):
    t = pl.program_id(0)

    @pl.when(t == 0)
    def _():
        h_scr[...] = h0_ref[...]

    # combined = ReLU(cat(x, h))  ==  cat(ReLU(x), ReLU(h))
    x = jnp.maximum(x_ref[0], 0.0)
    h = jnp.maximum(h_scr[...], 0.0)

    # combined = ReLU(c2c(combined)) ; c2c split into x / h halves
    comb = (jnp.dot(x, wxc_ref[...], preferred_element_type=jnp.float32)
            + jnp.dot(h, whc_ref[...], preferred_element_type=jnp.float32)
            + bc_ref[...])
    comb = jnp.maximum(comb, 0.0)

    # hidden = h2h(ReLU(i2h(combined)))
    h1 = jnp.maximum(
        jnp.dot(comb, wih_ref[...], preferred_element_type=jnp.float32) + bih_ref[...],
        0.0)
    h_new = jnp.dot(h1, whh_ref[...], preferred_element_type=jnp.float32) + bhh_ref[...]

    # output = o2o(ReLU(i2o(combined)))
    o1 = jnp.maximum(
        jnp.dot(comb, wio_ref[...], preferred_element_type=jnp.float32) + bio_ref[...],
        0.0)
    out = jnp.dot(o1, woo_ref[...], preferred_element_type=jnp.float32) + boo_ref[...]

    # carry hidden on-chip; emit (output | hidden) as one lane-dense slab
    h_scr[...] = h_new
    slab_ref[0, :, :o_pad] = out.astype(slab_ref.dtype)
    slab_ref[0, :, o_pad:] = h_new.astype(slab_ref.dtype)


def rnn_sequence_forward(x_seq, h0, padded, dims):
    """Run the RNN cell over a whole sequence in ONE pallas_call.

    x_seq: [T, B, input_size], h0: [B, hidden_size].
    Returns (out_seq [T, B, output_size], hid_seq [T, B, hidden_size])."""
    input_size, hidden_size, output_size = dims
    Ip, Hp, Op, Cp = _padded_dims(input_size, hidden_size, output_size)
    T, B, _ = x_seq.shape
    Bp = _round_up(B, SUBLANE)

    # zero-pad activations once (padding is inert through bias+ReLU: padded
    # weight rows/cols and bias entries are zero).
    x_p = jnp.zeros((T, Bp, Ip), jnp.float32).at[:, :B, :input_size].set(x_seq)
    h_p = jnp.zeros((Bp, Hp), jnp.float32).at[:B, :hidden_size].set(h0)

    kernel = functools.partial(_rnn_kernel, o_pad=Op)

    def w_spec(rows, cols):  # whole (padded) array, resident across all steps
        return pl.BlockSpec((rows, cols), lambda t: (0, 0))

    slab = pl.pallas_call(
        kernel,
        out_shape=jax.ShapeDtypeStruct((T, Bp, Op + Hp), jnp.float32),
        grid=(T,),
        in_specs=[
            pl.BlockSpec((1, Bp, Ip), lambda t: (t, 0, 0)),   # x_t streamed
            w_spec(Bp, Hp),                                   # h0
            w_spec(Ip, Cp), w_spec(Hp, Cp), w_spec(1, Cp),    # c2c (split) + bias
            w_spec(Cp, Hp), w_spec(1, Hp),                    # i2h
            w_spec(Hp, Hp), w_spec(1, Hp),                    # h2h
            w_spec(Cp, Op), w_spec(1, Op),                    # i2o
            w_spec(Op, Op), w_spec(1, Op),                    # o2o
        ],
        out_specs=pl.BlockSpec((1, Bp, Op + Hp), lambda t: (t, 0, 0)),
        scratch_shapes=[pltpu.VMEM((Bp, Hp), jnp.float32)],
        compiler_params=pltpu.CompilerParams(
            dimension_semantics=("arbitrary",)),  # sequential recurrence over time
    )(
        x_p, h_p,
        padded["wx_c2c"], padded["wh_c2c"], padded["b_c2c"],
        padded["w_i2h"], padded["b_i2h"],
        padded["w_h2h"], padded["b_h2h"],
        padded["w_i2o"], padded["b_i2o"],
        padded["w_o2o"], padded["b_o2o"],
    )

    out_seq = slab[:, :B, :output_size]
    hid_seq = slab[:, :B, Op:Op + hidden_size]
    return out_seq, hid_seq


def rnn_forward(x, h, padded, dims):
    """Single cell step (matches the PyTorch module forward): (out, hidden)."""
    out_seq, hid_seq = rnn_sequence_forward(x[None], h, padded, dims)
    return out_seq[0], hid_seq[0]


def init_params(key, input_size, hidden_size, output_size):
    """nn.Linear-style init (uniform +/- 1/sqrt(fan_in)); weights stored as
    [in_features, out_features] (transposed vs. PyTorch), bias [1, out]."""
    C = input_size + hidden_size
    layers = {
        "c2c": (C, C),
        "i2h": (C, hidden_size),
        "h2h": (hidden_size, hidden_size),
        "i2o": (C, output_size),
        "o2o": (output_size, output_size),
    }
    params = {}
    keys = jax.random.split(key, 2 * len(layers))
    for i, (name, (fan_in, fan_out)) in enumerate(layers.items()):
        bound = 1.0 / jnp.sqrt(jnp.float32(fan_in))
        params[f"w_{name}"] = jax.random.uniform(
            keys[2 * i], (fan_in, fan_out), jnp.float32, -bound, bound)
        params[f"b_{name}"] = jax.random.uniform(
            keys[2 * i + 1], (1, fan_out), jnp.float32, -bound, bound)
    return params


def pad_params(params, input_size, hidden_size, output_size):
    """Zero-pad weights/biases to lane-aligned shapes; split c2c into x/h halves."""
    I, H, O = input_size, hidden_size, output_size
    C = I + H
    Ip, Hp, Op, Cp = _padded_dims(I, H, O)

    def pad2(a, rows, cols):
        return jnp.pad(a, ((0, rows - a.shape[0]), (0, cols - a.shape[1])))

    w_c2c = params["w_c2c"]  # [C, C]
    return {
        "wx_c2c": pad2(w_c2c[:I], Ip, Cp),
        "wh_c2c": pad2(w_c2c[I:], Hp, Cp),
        "b_c2c": pad2(params["b_c2c"], 1, Cp),
        "w_i2h": pad2(params["w_i2h"], Cp, Hp),
        "b_i2h": pad2(params["b_i2h"], 1, Hp),
        "w_h2h": pad2(params["w_h2h"], Hp, Hp),
        "b_h2h": pad2(params["b_h2h"], 1, Hp),
        "w_i2o": pad2(params["w_i2o"], Cp, Op),
        "b_i2o": pad2(params["b_i2o"], 1, Op),
        "w_o2o": pad2(params["w_o2o"], Op, Op),
        "b_o2o": pad2(params["b_o2o"], 1, Op),
    }


def _reference_cell(x, h, params):
    comb = jnp.maximum(jnp.concatenate([x, h], axis=1), 0.0)
    comb = jnp.maximum(comb @ params["w_c2c"] + params["b_c2c"], 0.0)
    hid = jnp.maximum(comb @ params["w_i2h"] + params["b_i2h"], 0.0)
    hid = hid @ params["w_h2h"] + params["b_h2h"]
    out = jnp.maximum(comb @ params["w_i2o"] + params["b_i2o"], 0.0)
    out = out @ params["w_o2o"] + params["b_o2o"]
    return out, hid


if __name__ == "__main__":
    input_size, hidden_size, output_size = 16, 32, 8
    batch, seq_len = 2, 8
    dims = (input_size, hidden_size, output_size)

    key = jax.random.PRNGKey(0)
    kp, kx, kh, ks = jax.random.split(key, 4)
    params = init_params(kp, input_size, hidden_size, output_size)
    padded = pad_params(params, input_size, hidden_size, output_size)

    x = jax.random.normal(kx, (batch, input_size), jnp.float32)
    h = jax.random.normal(kh, (batch, hidden_size), jnp.float32)

    # Single-step forward (the module's forward semantics).
    out, hid = rnn_forward(x, h, padded, dims)
    jax.block_until_ready((out, hid))
    ref_out, ref_hid = _reference_cell(x, h, params)
    assert jnp.allclose(out, ref_out, atol=1e-4, rtol=1e-4)
    assert jnp.allclose(hid, ref_hid, atol=1e-4, rtol=1e-4)

    # Fused multi-step sequence: weights resident in VMEM, hidden in scratch.
    x_seq = jax.random.normal(ks, (seq_len, batch, input_size), jnp.float32)
    out_seq, hid_seq = rnn_sequence_forward(x_seq, h, padded, dims)
    jax.block_until_ready((out_seq, hid_seq))

    h_ref = h
    for t in range(seq_len):
        o_ref_t, h_ref = _reference_cell(x_seq[t], h_ref, params)
        assert jnp.allclose(out_seq[t], o_ref_t, atol=1e-3, rtol=1e-3)
        assert jnp.allclose(hid_seq[t], h_ref, atol=1e-3, rtol=1e-3)

    print("KERNEL_OK")
</pallas_src>

<mosaic_0001>
module attributes {stable_mosaic.version = 11 : i64} {
  func.func @_rnn_kernel(%arg0: i32, %arg1: memref<1x8x128xf32, #tpu.memory_space<vmem>>, %arg2: memref<8x128xf32, #tpu.memory_space<vmem>>, %arg3: memref<128x128xf32, #tpu.memory_space<vmem>>, %arg4: memref<128x128xf32, #tpu.memory_space<vmem>>, %arg5: memref<1x128xf32, #tpu.memory_space<vmem>>, %arg6: memref<128x128xf32, #tpu.memory_space<vmem>>, %arg7: memref<1x128xf32, #tpu.memory_space<vmem>>, %arg8: memref<128x128xf32, #tpu.memory_space<vmem>>, %arg9: memref<1x128xf32, #tpu.memory_space<vmem>>, %arg10: memref<128x128xf32, #tpu.memory_space<vmem>>, %arg11: memref<1x128xf32, #tpu.memory_space<vmem>>, %arg12: memref<128x128xf32, #tpu.memory_space<vmem>>, %arg13: memref<1x128xf32, #tpu.memory_space<vmem>>, %arg14: memref<1x8x256xf32, #tpu.memory_space<vmem>>, %arg15: memref<8x128xf32, #tpu.memory_space<vmem>>) attributes {dimension_semantics = [#tpu.dimension_semantics<arbitrary>], iteration_bounds = array<i64: 1>, scalar_prefetch = 0 : i64, scratch_operands = 1 : i64, tpu.core_type = #tpu.core_type<tc>, window_params = [{transform_indices = @transform_0, window_bounds = array<i64: 1, 8, 128>}, {pipeline_mode = #tpu.pipeline_mode<synchronous>, transform_indices = @transform_1, window_bounds = array<i64: 8, 128>}, {pipeline_mode = #tpu.pipeline_mode<synchronous>, transform_indices = @transform_2, window_bounds = array<i64: 128, 128>}, {pipeline_mode = #tpu.pipeline_mode<synchronous>, transform_indices = @transform_3, window_bounds = array<i64: 128, 128>}, {pipeline_mode = #tpu.pipeline_mode<synchronous>, transform_indices = @transform_4, window_bounds = array<i64: 1, 128>}, {pipeline_mode = #tpu.pipeline_mode<synchronous>, transform_indices = @transform_5, window_bounds = array<i64: 128, 128>}, {pipeline_mode = #tpu.pipeline_mode<synchronous>, transform_indices = @transform_6, window_bounds = array<i64: 1, 128>}, {pipeline_mode = #tpu.pipeline_mode<synchronous>, transform_indices = @transform_7, window_bounds = array<i64: 128, 128>}, {pipeline_mode = #tpu.pipeline_mode<synchronous>, transform_indices = @transform_8, window_bounds = array<i64: 1, 128>}, {pipeline_mode = #tpu.pipeline_mode<synchronous>, transform_indices = @transform_9, window_bounds = array<i64: 128, 128>}, {pipeline_mode = #tpu.pipeline_mode<synchronous>, transform_indices = @transform_10, window_bounds = array<i64: 1, 128>}, {pipeline_mode = #tpu.pipeline_mode<synchronous>, transform_indices = @transform_11, window_bounds = array<i64: 128, 128>}, {pipeline_mode = #tpu.pipeline_mode<synchronous>, transform_indices = @transform_12, window_bounds = array<i64: 1, 128>}, {transform_indices = @transform_13, window_bounds = array<i64: 1, 8, 256>}]} {
    %c0_i32 = arith.constant 0 : i32
    %0 = arith.cmpi eq, %arg0, %c0_i32 : i32
    %1 = arith.extui %0 : i1 to i32
    %c0_i32_0 = arith.constant 0 : i32
    %2 = arith.cmpi ne, %1, %c0_i32_0 : i32
    scf.if %2 {
      %c0_44 = arith.constant 0 : index
      %c0_45 = arith.constant 0 : index
      %51 = vector.load %arg2[%c0_44, %c0_45] : memref<8x128xf32, #tpu.memory_space<vmem>>, vector<8x128xf32>
      %c0_46 = arith.constant 0 : index
      %c0_47 = arith.constant 0 : index
      %52 = vector.load %arg15[%c0_46, %c0_47] : memref<8x128xf32, #tpu.memory_space<vmem>>, vector<8x128xf32>
      tpu.vector_store %arg15[%c0_46, %c0_47], %51 {strides = array<i32>} : memref<8x128xf32, #tpu.memory_space<vmem>>, vector<8x128xf32>,
    } else {
    }
    %c0 = arith.constant 0 : index
    %c0_1 = arith.constant 0 : index
    %c0_2 = arith.constant 0 : index
    %3 = vector.load %arg1[%c0, %c0_1, %c0_2] : memref<1x8x128xf32, #tpu.memory_space<vmem>>, vector<1x8x128xf32>
    %4 = vector.shape_cast %3 : vector<1x8x128xf32> to vector<8x128xf32>
    %cst = arith.constant 0.000000e+00 : f32
    %5 = vector.broadcast %cst : f32 to vector<8x128xf32>
    %6 = arith.maximumf %4, %5 : vector<8x128xf32>
    %c0_3 = arith.constant 0 : index
    %c0_4 = arith.constant 0 : index
    %7 = vector.load %arg15[%c0_3, %c0_4] : memref<8x128xf32, #tpu.memory_space<vmem>>, vector<8x128xf32>
    %cst_5 = arith.constant 0.000000e+00 : f32
    %8 = vector.broadcast %cst_5 : f32 to vector<8x128xf32>
    %9 = arith.maximumf %7, %8 : vector<8x128xf32>
    %c0_6 = arith.constant 0 : index
    %c0_7 = arith.constant 0 : index
    %10 = vector.load %arg3[%c0_6, %c0_7] : memref<128x128xf32, #tpu.memory_space<vmem>>, vector<128x128xf32>
    %cst_8 = arith.constant dense<0.000000e+00> : vector<8x128xf32>
    %11 = tpu.matmul %6, %10, %cst_8 {dimension_numbers = #tpu.dot_dimension_numbers<[1], [0], [0], [1], [0, 0, 1, 1], [], []>} : vector<8x128xf32>, vector<128x128xf32>, vector<8x128xf32> -> vector<8x128xf32>
    %c0_9 = arith.constant 0 : index
    %c0_10 = arith.constant 0 : index
    %12 = vector.load %arg4[%c0_9, %c0_10] : memref<128x128xf32, #tpu.memory_space<vmem>>, vector<128x128xf32>
    %cst_11 = arith.constant dense<0.000000e+00> : vector<8x128xf32>
    %13 = tpu.matmul %9, %12, %cst_11 {dimension_numbers = #tpu.dot_dimension_numbers<[1], [0], [0], [1], [0, 0, 1, 1], [], []>} : vector<8x128xf32>, vector<128x128xf32>, vector<8x128xf32> -> vector<8x128xf32>
    %14 = arith.addf %11, %13 : vector<8x128xf32>
    %c0_12 = arith.constant 0 : index
    %c0_13 = arith.constant 0 : index
    %15 = vector.load %arg5[%c0_12, %c0_13] : memref<1x128xf32, #tpu.memory_space<vmem>>, vector<1x128xf32>
    %16 = vector.broadcast %15 : vector<1x128xf32> to vector<8x128xf32>
    %17 = arith.addf %14, %16 : vector<8x128xf32>
    %cst_14 = arith.constant 0.000000e+00 : f32
    %18 = vector.broadcast %cst_14 : f32 to vector<8x128xf32>
    %19 = arith.maximumf %17, %18 : vector<8x128xf32>
    %c0_15 = arith.constant 0 : index
    %c0_16 = arith.constant 0 : index
    %20 = vector.load %arg6[%c0_15, %c0_16] : memref<128x128xf32, #tpu.memory_space<vmem>>, vector<128x128xf32>
    %cst_17 = arith.constant dense<0.000000e+00> : vector<8x128xf32>
    %21 = tpu.matmul %19, %20, %cst_17 {dimension_numbers = #tpu.dot_dimension_numbers<[1], [0], [0], [1], [0, 0, 1, 1], [], []>} : vector<8x128xf32>, vector<128x128xf32>, vector<8x128xf32> -> vector<8x128xf32>
    %c0_18 = arith.constant 0 : index
    %c0_19 = arith.constant 0 : index
    %22 = vector.load %arg7[%c0_18, %c0_19] : memref<1x128xf32, #tpu.memory_space<vmem>>, vector<1x128xf32>
    %23 = vector.broadcast %22 : vector<1x128xf32> to vector<8x128xf32>
    %24 = arith.addf %21, %23 : vector<8x128xf32>
    %cst_20 = arith.constant 0.000000e+00 : f32
    %25 = vector.broadcast %cst_20 : f32 to vector<8x128xf32>
    %26 = arith.maximumf %24, %25 : vector<8x128xf32>
    %c0_21 = arith.constant 0 : index
    %c0_22 = arith.constant 0 : index
    %27 = vector.load %arg8[%c0_21, %c0_22] : memref<128x128xf32, #tpu.memory_space<vmem>>, vector<128x128xf32>
    %cst_23 = arith.constant dense<0.000000e+00> : vector<8x128xf32>
    %28 = tpu.matmul %26, %27, %cst_23 {dimension_numbers = #tpu.dot_dimension_numbers<[1], [0], [0], [1], [0, 0, 1, 1], [], []>} : vector<8x128xf32>, vector<128x128xf32>, vector<8x128xf32> -> vector<8x128xf32>
    %c0_24 = arith.constant 0 : index
    %c0_25 = arith.constant 0 : index
    %29 = vector.load %arg9[%c0_24, %c0_25] : memref<1x128xf32, #tpu.memory_space<vmem>>, vector<1x128xf32>
    %30 = vector.broadcast %29 : vector<1x128xf32> to vector<8x128xf32>
    %31 = arith.addf %28, %30 : vector<8x128xf32>
    %c0_26 = arith.constant 0 : index
    %c0_27 = arith.constant 0 : index
    %32 = vector.load %arg10[%c0_26, %c0_27] : memref<128x128xf32, #tpu.memory_space<vmem>>, vector<128x128xf32>
    %cst_28 = arith.constant dense<0.000000e+00> : vector<8x128xf32>
    %33 = tpu.matmul %19, %32, %cst_28 {dimension_numbers = #tpu.dot_dimension_numbers<[1], [0], [0], [1], [0, 0, 1, 1], [], []>} : vector<8x128xf32>, vector<128x128xf32>, vector<8x128xf32> -> vector<8x128xf32>
    %c0_29 = arith.constant 0 : index
    %c0_30 = arith.constant 0 : index
    %34 = vector.load %arg11[%c0_29, %c0_30] : memref<1x128xf32, #tpu.memory_space<vmem>>, vector<1x128xf32>
    %35 = vector.broadcast %34 : vector<1x128xf32> to vector<8x128xf32>
    %36 = arith.addf %33, %35 : vector<8x128xf32>
    %cst_31 = arith.constant 0.000000e+00 : f32
    %37 = vector.broadcast %cst_31 : f32 to vector<8x128xf32>
    %38 = arith.maximumf %36, %37 : vector<8x128xf32>
    %c0_32 = arith.constant 0 : index
    %c0_33 = arith.constant 0 : index
    %39 = vector.load %arg12[%c0_32, %c0_33] : memref<128x128xf32, #tpu.memory_space<vmem>>, vector<128x128xf32>
    %cst_34 = arith.constant dense<0.000000e+00> : vector<8x128xf32>
    %40 = tpu.matmul %38, %39, %cst_34 {dimension_numbers = #tpu.dot_dimension_numbers<[1], [0], [0], [1], [0, 0, 1, 1], [], []>} : vector<8x128xf32>, vector<128x128xf32>, vector<8x128xf32> -> vector<8x128xf32>
    %c0_35 = arith.constant 0 : index
    %c0_36 = arith.constant 0 : index
    %41 = vector.load %arg13[%c0_35, %c0_36] : memref<1x128xf32, #tpu.memory_space<vmem>>, vector<1x128xf32>
    %42 = vector.broadcast %41 : vector<1x128xf32> to vector<8x128xf32>
    %43 = arith.addf %40, %42 : vector<8x128xf32>
    %c0_37 = arith.constant 0 : index
    %c0_38 = arith.constant 0 : index
    %44 = vector.load %arg15[%c0_37, %c0_38] : memref<8x128xf32, #tpu.memory_space<vmem>>, vector<8x128xf32>
    tpu.vector_store %arg15[%c0_37, %c0_38], %31 {strides = array<i32>} : memref<8x128xf32, #tpu.memory_space<vmem>>, vector<8x128xf32>,
    %c0_39 = arith.constant 0 : index
    %c0_40 = arith.constant 0 : index
    %c0_41 = arith.constant 0 : index
    %45 = vector.load %arg14[%c0_39, %c0_40, %c0_41] : memref<1x8x256xf32, #tpu.memory_space<vmem>>, vector<1x8x128xf32>
    %46 = vector.shape_cast %45 : vector<1x8x128xf32> to vector<8x128xf32>
    %47 = vector.shape_cast %43 : vector<8x128xf32> to vector<1x8x128xf32>
    tpu.vector_store %arg14[%c0_39, %c0_40, %c0_41], %47 {strides = array<i32>} : memref<1x8x256xf32, #tpu.memory_space<vmem>>, vector<1x8x128xf32>,
    %c0_42 = arith.constant 0 : index
    %c0_43 = arith.constant 0 : index
    %c128 = arith.constant 128 : index
    %48 = vector.load %arg14[%c0_42, %c0_43, %c128] : memref<1x8x256xf32, #tpu.memory_space<vmem>>, vector<1x8x128xf32>
    %49 = vector.shape_cast %48 : vector<1x8x128xf32> to vector<8x128xf32>
    %50 = vector.shape_cast %31 : vector<8x128xf32> to vector<1x8x128xf32>
    tpu.vector_store %arg14[%c0_42, %c0_43, %c128], %50 {strides = array<i32>} : memref<1x8x256xf32, #tpu.memory_space<vmem>>, vector<1x8x128xf32>,
    return
  }
  func.func @transform_0(%arg0: i32) -> (i32, i32, i32) {
    %c0_i32 = arith.constant 0 : i32
    %c0_i32_0 = arith.constant 0 : i32
    %c0_i32_1 = arith.constant 0 : i32
    return %arg0, %c0_i32, %c0_i32_0 : i32, i32, i32
  }
  func.func @transform_1(%arg0: i32) -> (i32, i32) {
    %c0_i32 = arith.constant 0 : i32
    %c0_i32_0 = arith.constant 0 : i32
    %c0_i32_1 = arith.constant 0 : i32
    return %c0_i32, %c0_i32_0 : i32, i32
  }
  func.func @transform_2(%arg0: i32) -> (i32, i32) {
    %c0_i32 = arith.constant 0 : i32
    %c0_i32_0 = arith.constant 0 : i32
    %c0_i32_1 = arith.constant 0 : i32
    return %c0_i32, %c0_i32_0 : i32, i32
  }
  func.func @transform_3(%arg0: i32) -> (i32, i32) {
    %c0_i32 = arith.constant 0 : i32
    %c0_i32_0 = arith.constant 0 : i32
    %c0_i32_1 = arith.constant 0 : i32
    return %c0_i32, %c0_i32_0 : i32, i32
  }
  func.func @transform_4(%arg0: i32) -> (i32, i32) {
    %c0_i32 = arith.constant 0 : i32
    %c0_i32_0 = arith.constant 0 : i32
    %c0_i32_1 = arith.constant 0 : i32
    return %c0_i32, %c0_i32_0 : i32, i32
  }
  func.func @transform_5(%arg0: i32) -> (i32, i32) {
    %c0_i32 = arith.constant 0 : i32
    %c0_i32_0 = arith.constant 0 : i32
    %c0_i32_1 = arith.constant 0 : i32
    return %c0_i32, %c0_i32_0 : i32, i32
  }
  func.func @transform_6(%arg0: i32) -> (i32, i32) {
    %c0_i32 = arith.constant 0 : i32
    %c0_i32_0 = arith.constant 0 : i32
    %c0_i32_1 = arith.constant 0 : i32
    return %c0_i32, %c0_i32_0 : i32, i32
  }
  func.func @transform_7(%arg0: i32) -> (i32, i32) {
    %c0_i32 = arith.constant 0 : i32
    %c0_i32_0 = arith.constant 0 : i32
    %c0_i32_1 = arith.constant 0 : i32
    return %c0_i32, %c0_i32_0 : i32, i32
  }
  func.func @transform_8(%arg0: i32) -> (i32, i32) {
    %c0_i32 = arith.constant 0 : i32
    %c0_i32_0 = arith.constant 0 : i32
    %c0_i32_1 = arith.constant 0 : i32
    return %c0_i32, %c0_i32_0 : i32, i32
  }
  func.func @transform_9(%arg0: i32) -> (i32, i32) {
    %c0_i32 = arith.constant 0 : i32
    %c0_i32_0 = arith.constant 0 : i32
    %c0_i32_1 = arith.constant 0 : i32
    return %c0_i32, %c0_i32_0 : i32, i32
  }
  func.func @transform_10(%arg0: i32) -> (i32, i32) {
    %c0_i32 = arith.constant 0 : i32
    %c0_i32_0 = arith.constant 0 : i32
    %c0_i32_1 = arith.constant 0 : i32
    return %c0_i32, %c0_i32_0 : i32, i32
  }
  func.func @transform_11(%arg0: i32) -> (i32, i32) {
    %c0_i32 = arith.constant 0 : i32
    %c0_i32_0 = arith.constant 0 : i32
    %c0_i32_1 = arith.constant 0 : i32
    return %c0_i32, %c0_i32_0 : i32, i32
  }
  func.func @transform_12(%arg0: i32) -> (i32, i32) {
    %c0_i32 = arith.constant 0 : i32
    %c0_i32_0 = arith.constant 0 : i32
    %c0_i32_1 = arith.constant 0 : i32
    return %c0_i32, %c0_i32_0 : i32, i32
  }
  func.func @transform_13(%arg0: i32) -> (i32, i32, i32) {
    %c0_i32 = arith.constant 0 : i32
    %c0_i32_0 = arith.constant 0 : i32
    %c0_i32_1 = arith.constant 0 : i32
    return %arg0, %c0_i32, %c0_i32_0 : i32, i32, i32
  }
}

</mosaic_0001>

<bundles_post_ra>
// kernel: tpu_custom_call.1
= control target key start
LH: loop header
LB: loop body
LE: loop exit
PB: predicated region body
PF: predicated region fallthrough
CT: control target
= control target key end

     0   :  { %18 = vsyncpa [#allocation4], 0  ;;  %s1707_s0 = inlined_call_operand.hbm [shape: f32[1,8,128], index: 0, kind: input, shape index: {}]   ;;  %s1708_s1 = inlined_call_operand.hbm [shape: f32[8,128], index: 1, kind: input, shape index: {}]   ;;  %s1709_s2 = inlined_call_operand.hbm [shape: f32[128,128], index: 2, kind: input, shape index: {}]   ;;  %s1710_s3 = inlined_call_operand.hbm [shape: f32[128,128], index: 3, kind: input, shape index: {}]   ;;  %s1711_s4 = inlined_call_operand.vmem [shape: f32[1,128], index: 4, kind: input, shape index: {}]   ;;  %s1712_s5 = inlined_call_operand.hbm [shape: f32[128,128], index: 5, kind: input, shape index: {}]   ;;  %s1713_s6 = inlined_call_operand.vmem [shape: f32[1,128], index: 6, kind: input, shape index: {}]   ;;  %s1714_s7 = inlined_call_operand.hbm [shape: f32[128,128], index: 7, kind: input, shape index: {}]   ;;  %s1715_s8 = inlined_call_operand.vmem [shape: f32[1,128], index: 8, kind: input, shape index: {}]   ;;  %s1716_s9 = inlined_call_operand.hbm [shape: f32[128,128], index: 9, kind: input, shape index: {}]   ;;  %s1717_s10 = inlined_call_operand.vmem [shape: f32[1,128], index: 10, kind: input, shape index: {}]   ;;  %s1718_s11 = inlined_call_operand.hbm [shape: f32[128,128], index: 11, kind: input, shape index: {}]   ;;  %s1719_s12 = inlined_call_operand.vmem [shape: f32[1,128], index: 12, kind: input, shape index: {}]   ;;  %s1720_s13 = inlined_call_operand.hbm [shape: f32[1,8,256], index: 13, kind: output, shape index: {}]  }
   0x1   :  { %19 = vsyncpa [#allocation7], 0 }
   0x2   :  { %20 = vsyncpa [#allocation10], 0 }
   0x3   :  { %21 = vsyncpa [#allocation13], 0 }
   0x4   :  { %22 = vsyncpa [#allocation16], 0 }
   0x5   :  { %23 = vsyncpa [#allocation5], 0  ;;  %s1422_s25 = smov [#allocation6]   ;;  %s1212_s29 = scalar_lea.hbm %s1708_s1, 128 }
   0x6   :  { %s40_s26 = sshll.u32 %s1422_s25, 4  ;;  %p1213_p0 = scmp.ne.s32.totalorder %s1708_s1, %s1212_s29  ;;  %s41_s26 = int_to_ptr.vmem [resolvable:$true] %s40_s26 }
   0x7   :  { %p1216_p1 = scmp.lt.u32.totalorder %s1212_s29, %s1708_s1 }
   0x9   :  { %p1218_p2 = pnand %p1216_p1, %p1213_p0 }
   0xb   :  { %1221 = shalt.err (!%p1218_p2)
}
   0xc   :  { %s1222_s17 = scalar_lea.vmem %s41_s26, 128  ;;  %p1227_p4 = scmp.lt.s32.totalorder %s41_s26, %s41_s26 }
   0xd   :  { %p1223_p3 = scmp.ne.s32.totalorder %s41_s26, %s1222_s17  ;;  %p1228_p5 = scmp.lt.s32.totalorder %s1222_s17, %s1222_s17 }
   0xf   :  { %p1229_p6 = por %p1228_p5, %p1227_p4 }
  0x11   :  { %p1230_p7 = pnand %p1229_p6, %p1223_p3 }
  0x13   :  { %1233 = shalt.err (!%p1230_p7)
}
  0x14   :  { %43 = dma.hbm_to_vmem [thread:$0]  %s1708_s1, 128, %s41_s26, [#allocation7]  }
  0x15   :  { %s1423_s20 = smov [#allocation9]   ;;  %s1424_s22 = smov [#allocation12]  }
  0x16   :  { %s61_s21 = sshll.u32 %s1423_s20, 4  ;;  %s89_s23 = sshll.u32 %s1424_s22, 4  ;;  %s62_s21 = int_to_ptr.vmem [resolvable:$true] %s61_s21  ;;  %s90_s23 = int_to_ptr.vmem [resolvable:$true] %s89_s23 }
  0x17   :  { %s1234_s27 = scalar_lea.hbm %s1710_s3, 2048 }
  0x18   :  { %p1235_p8 = scmp.ne.s32.totalorder %s1710_s3, %s1234_s27  ;;  %p1238_p9 = scmp.lt.u32.totalorder %s1234_s27, %s1710_s3 }
  0x1a   :  { %p1240_p10 = pnand %p1238_p9, %p1235_p8 }
  0x1c   :  { %1243 = shalt.err (!%p1240_p10)
}
  0x1d   :  { %s1244_s1 = scalar_lea.vmem %s62_s21, 2048  ;;  %p1249_p12 = scmp.lt.s32.totalorder %s62_s21, %s62_s21 }
  0x1e   :  { %p1245_p11 = scmp.ne.s32.totalorder %s62_s21, %s1244_s1  ;;  %p1250_p13 = scmp.lt.s32.totalorder %s1244_s1, %s1244_s1 }
  0x20   :  { %p1251_p0 = por %p1250_p13, %p1249_p12 }
  0x22   :  { %p1252_p1 = pnand %p1251_p0, %p1245_p11 }
  0x24   :  { %1255 = shalt.err (!%p1252_p1)
}
  0x25   :  { %s1425_s26 = smov 128   ;;  %s1426_s15 = smov 8  }
  0x26   :  { %67 = dma.hbm_to_vmem [thread:$0]  %s1710_s3, 2048, %s62_s21, [#allocation10], %s1425_s26, %s1425_s26, %s1426_s15  }
  0x27   :  { %s1256_s20 = scalar_lea.hbm %s1714_s7, 2048 }
  0x28   :  { %p1257_p2 = scmp.ne.s32.totalorder %s1714_s7, %s1256_s20  ;;  %p1260_p3 = scmp.lt.u32.totalorder %s1256_s20, %s1714_s7 }
  0x2a   :  { %p1262_p4 = pnand %p1260_p3, %p1257_p2 }
  0x2c   :  { %1265 = shalt.err (!%p1262_p4)
}
  0x2d   :  { %s1266_s28 = scalar_lea.vmem %s90_s23, 2048  ;;  %p1271_p6 = scmp.lt.s32.totalorder %s90_s23, %s90_s23 }
  0x2e   :  { %p1267_p5 = scmp.ne.s32.totalorder %s90_s23, %s1266_s28  ;;  %p1272_p7 = scmp.lt.s32.totalorder %s1266_s28, %s1266_s28 }
  0x30   :  { %p1273_p8 = por %p1272_p7, %p1271_p6 }
  0x32   :  { %p1274_p9 = pnand %p1273_p8, %p1267_p5 }
  0x34   :  { %1277 = shalt.err (!%p1274_p9)
}
  0x35   :  { %95 = dma.hbm_to_vmem [thread:$0]  %s1714_s7, 2048, %s90_s23, [#allocation13], %s1425_s26, %s1425_s26, %s1426_s15  }
  0x36   :  { %s1427_s29 = smov [#allocation3]   ;;  %s1428_s14 = smov [#allocation8]  }
  0x37   :  { %s30_s30 = sshll.u32 %s1427_s29, 4  ;;  %s49_s1 = sshll.u32 %s1428_s14, 4  ;;  %s31_s30 = int_to_ptr.vmem [resolvable:$true] %s30_s30  ;;  %s50_s1 = int_to_ptr.vmem [resolvable:$true] %s49_s1 }
  0x38   :  { %s1278_s18 = scalar_lea.hbm %s1707_s0, 128 }
  0x39   :  { %p1279_p10 = scmp.ne.s32.totalorder %s1707_s0, %s1278_s18  ;;  %p1282_p11 = scmp.lt.u32.totalorder %s1278_s18, %s1707_s0 }
  0x3b   :  { %p1284_p12 = pnand %p1282_p11, %p1279_p10 }
  0x3d   :  { %1287 = shalt.err (!%p1284_p12)
}
  0x3e   :  { %s1288_s7 = scalar_lea.vmem %s31_s30, 128  ;;  %p1293_p0 = scmp.lt.s32.totalorder %s31_s30, %s31_s30 }
  0x3f   :  { %p1289_p13 = scmp.ne.s32.totalorder %s31_s30, %s1288_s7  ;;  %p1294_p1 = scmp.lt.s32.totalorder %s1288_s7, %s1288_s7 }
  0x41   :  { %p1295_p2 = por %p1294_p1, %p1293_p0 }
  0x43   :  { %p1296_p3 = pnand %p1295_p2, %p1289_p13 }
  0x45   :  { %1299 = shalt.err (!%p1296_p3)
}
  0x46   :  { %33 = dma.hbm_to_vmem [thread:$0]  %s1707_s0, 128, %s31_s30, [#allocation4]  }
  0x47   :  { %s1300_s3 = scalar_lea.hbm %s1709_s2, 2048 }
  0x48   :  { %p1301_p4 = scmp.ne.s32.totalorder %s1709_s2, %s1300_s3  ;;  %p1304_p5 = scmp.lt.u32.totalorder %s1300_s3, %s1709_s2 }
  0x4a   :  { %p1306_p6 = pnand %p1304_p5, %p1301_p4 }
  0x4c   :  { %1309 = shalt.err (!%p1306_p6)
}
  0x4d   :  { %s1310_s17 = scalar_lea.vmem %s50_s1, 2048  ;;  %p1315_p8 = scmp.lt.s32.totalorder %s50_s1, %s50_s1 }
  0x4e   :  { %p1311_p7 = scmp.ne.s32.totalorder %s50_s1, %s1310_s17  ;;  %p1316_p9 = scmp.lt.s32.totalorder %s1310_s17, %s1310_s17 }
  0x50   :  { %p1317_p10 = por %p1316_p9, %p1315_p8 }
  0x52   :  { %p1318_p11 = pnand %p1317_p10, %p1311_p7 }
  0x54   :  { %1321 = shalt.err (!%p1318_p11)
}
  0x55   :  { %55 = dma.hbm_to_vmem [thread:$0]  %s1709_s2, 2048, %s50_s1, [#allocation7], %s1425_s26, %s1425_s26, %s1426_s15  }
  0x56   :  { %s1429_s18 = smov [#allocation11]   ;;  %s1430_s20 = smov [#allocation14]  }
  0x57   :  { %s75_s19 = sshll.u32 %s1429_s18, 4  ;;  %s103_s22 = sshll.u32 %s1430_s20, 4  ;;  %s76_s19 = int_to_ptr.vmem [resolvable:$true] %s75_s19  ;;  %s104_s22 = int_to_ptr.vmem [resolvable:$true] %s103_s22 }
  0x58   :  { %s1322_s23 = scalar_lea.hbm %s1712_s5, 2048 }
  0x59   :  { %p1323_p12 = scmp.ne.s32.totalorder %s1712_s5, %s1322_s23  ;;  %p1326_p13 = scmp.lt.u32.totalorder %s1322_s23, %s1712_s5 }
  0x5b   :  { %p1328_p0 = pnand %p1326_p13, %p1323_p12 }
  0x5d   :  { %1331 = shalt.err (!%p1328_p0)
}
  0x5e   :  { %s1332_s2 = scalar_lea.vmem %s76_s19, 2048  ;;  %p1337_p2 = scmp.lt.s32.totalorder %s76_s19, %s76_s19 }
  0x5f   :  { %p1333_p1 = scmp.ne.s32.totalorder %s76_s19, %s1332_s2  ;;  %p1338_p3 = scmp.lt.s32.totalorder %s1332_s2, %s1332_s2 }
  0x61   :  { %p1339_p4 = por %p1338_p3, %p1337_p2 }
  0x63   :  { %p1340_p5 = pnand %p1339_p4, %p1333_p1 }
  0x65   :  { %1343 = shalt.err (!%p1340_p5)
}
  0x66   :  { %81 = dma.hbm_to_vmem [thread:$0]  %s1712_s5, 2048, %s76_s19, [#allocation10], %s1425_s26, %s1425_s26, %s1426_s15  }
  0x67   :  { %s1344_s16 = scalar_lea.hbm %s1716_s9, 2048 }
  0x68   :  { %p1345_p6 = scmp.ne.s32.totalorder %s1716_s9, %s1344_s16  ;;  %p1348_p7 = scmp.lt.u32.totalorder %s1344_s16, %s1716_s9 }
  0x6a   :  { %p1350_p8 = pnand %p1348_p7, %p1345_p6 }
  0x6c   :  { %1353 = shalt.err (!%p1350_p8)
}
  0x6d   :  { %s1354_s20 = scalar_lea.vmem %s104_s22, 2048  ;;  %p1359_p10 = scmp.lt.s32.totalorder %s104_s22, %s104_s22 }
  0x6e   :  { %p1355_p9 = scmp.ne.s32.totalorder %s104_s22, %s1354_s20  ;;  %p1360_p11 = scmp.lt.s32.totalorder %s1354_s20, %s1354_s20 }
  0x70   :  { %p1361_p12 = por %p1360_p11, %p1359_p10 }
  0x72   :  { %p1362_p13 = pnand %p1361_p12, %p1355_p9 }
  0x74   :  { %1365 = shalt.err (!%p1362_p13)
}
  0x75   :  { %109 = dma.hbm_to_vmem [thread:$0]  %s1716_s9, 2048, %s104_s22, [#allocation13], %s1425_s26, %s1425_s26, %s1426_s15  }
  0x76   :  { %s1431_s24 = smov [#allocation15]   ;;  %s1366_s27 = scalar_lea.hbm %s1718_s11, 2048 }
  0x77   :  { %s117_s7 = sshll.u32 %s1431_s24, 4  ;;  %p1367_p0 = scmp.ne.s32.totalorder %s1718_s11, %s1366_s27  ;;  %s118_s7 = int_to_ptr.vmem [resolvable:$true] %s117_s7 }
  0x78   :  { %p1370_p1 = scmp.lt.u32.totalorder %s1366_s27, %s1718_s11 }
  0x7a   :  { %p1372_p2 = pnand %p1370_p1, %p1367_p0 }
  0x7c   :  { %1375 = shalt.err (!%p1372_p2)
}
  0x7d   :  { %s1376_s21 = scalar_lea.vmem %s118_s7, 2048  ;;  %p1381_p4 = scmp.lt.s32.totalorder %s118_s7, %s118_s7 }
  0x7e   :  { %p1377_p3 = scmp.ne.s32.totalorder %s118_s7, %s1376_s21  ;;  %p1382_p5 = scmp.lt.s32.totalorder %s1376_s21, %s1376_s21 }
  0x80   :  { %p1383_p6 = por %p1382_p5, %p1381_p4 }
  0x82   :  { %p1384_p7 = pnand %p1383_p6, %p1377_p3 }
  0x84   :  { %1387 = shalt.err (!%p1384_p7)
}
  0x85   :  { %123 = dma.hbm_to_vmem [thread:$0]  %s1718_s11, 2048, %s118_s7, [#allocation16], %s1425_s26, %s1425_s26, %s1426_s15  }
  0x86   :  { %1410 = dma.done.wait [#allocation4], 128  }
  0x87   :  { %1411 = vsyncadd [#allocation4], 4294967168 }
  0x88   :  { %1412 = dma.done.wait [#allocation7], 2176  }
  0x89   :  { %1413 = vsyncadd [#allocation7], 4294965120 }
  0x8a   :  { %1414 = dma.done.wait [#allocation10], 4096  }
  0x8b   :  { %1415 = vsyncadd [#allocation10], 4294963200 }
  0x8c   :  { %1416 = dma.done.wait [#allocation13], 4096  }
  0x8d   :  { %1417 = vsyncadd [#allocation13], 4294963200 }
  0x8e   :  { %1418 = dma.done.wait [#allocation16], 2048  }
  0x8f   :  { %1419 = vsyncadd [#allocation16], 4294965248  ;;  %v1432_v0 = vmov 0.0|0.0   ;;  %vm1433_vm0 = vmmov 0   ;;  %v1434_v1 = vmov 0.0   ;;  %v176_v2 = vld [vmem:[#allocation9] sm:$0xff] }
  0x90   :  { %1054 = vmatprep.subr.bf16.mxu0 %v1432_v0  ;;  %1078 = vmatprep.subr.bf16.mxu1 %v1432_v0  ;;  %v177_v3 = vld [vmem:[#allocation9 + $0x8] sm:$0xff]  ;;  %v160_v4 = vld [vmem:[#allocation8] sm:$0xff]  ;;  %v178_v7 = vld [vmem:[#allocation9 + $0x10] sm:$0xff] }
  0x91   :  { %876 = vmatprep.mubr.msk.f32.mxu0 %vm1433_vm0, %v1434_v1  ;;  %911 = vmatprep.mubr.msk.f32.mxu1 %vm1433_vm0, %v1434_v1  ;;  %v1055_v5 = vpack.c.bf16 %v177_v3, %v176_v2  ;;  %v161_v6 = vld [vmem:[#allocation8 + $0x8] sm:$0xff]  ;;  %v179_v8 = vld [vmem:[#allocation9 + $0x18] sm:$0xff]  ;;  %v162_v10 = vld [vmem:[#allocation8 + $0x10] sm:$0xff] }
  0x92   :  { %v1079_v9 = vpack.c.bf16 %v161_v6, %v160_v4  ;;  %v163_v11 = vld [vmem:[#allocation8 + $0x18] sm:$0xff]  ;;  %v1058_v12 = vpack.c.bf16 %v179_v8, %v178_v7  ;;  %v180_v14 = vld [vmem:[#allocation9 + $0x20] sm:$0xff]  ;;  %v181_v15 = vld [vmem:[#allocation9 + $0x28] sm:$0xff] }
  0x93   :  { %1056 = vmatpush3.bf16.msra.mxu0 %v1055_v5  ;;  %v1082_v13 = vpack.c.bf16 %v163_v11, %v162_v10  ;;  %v164_v16 = vld [vmem:[#allocation8 + $0x20] sm:$0xff]  ;;  %v165_v17 = vld [vmem:[#allocation8 + $0x28] sm:$0xff]  ;;  %v1061_v18 = vpack.c.bf16 %v181_v15, %v180_v14  ;;  %v182_v20 = vld [vmem:[#allocation9 + $0x30] sm:$0xff] }
  0x94   :  { %1080 = vmatpush3.bf16.msra.mxu1 %v1079_v9  ;;  %1057 = vmatprep.subr.bf16.mxu0 %v1432_v0  ;;  %v1085_v19 = vpack.c.bf16 %v165_v17, %v164_v16  ;;  %v183_v21 = vld [vmem:[#allocation9 + $0x38] sm:$0xff]  ;;  %v166_v22 = vld [vmem:[#allocation8 + $0x30] sm:$0xff]  ;;  %v184_v26 = vld [vmem:[#allocation9 + $0x40] sm:$0xff] }
  0x95   :  { %1081 = vmatprep.subr.bf16.mxu1 %v1432_v0  ;;  %v167_v23 = vld [vmem:[#allocation8 + $0x38] sm:$0xff]  ;;  %v1064_v24 = vpack.c.bf16 %v183_v21, %v182_v20  ;;  %v185_v27 = vld [vmem:[#allocation9 + $0x48] sm:$0xff]  ;;  %v168_v28 = vld [vmem:[#allocation8 + $0x40] sm:$0xff] }
  0x96   :  { %v1088_v25 = vpack.c.bf16 %v167_v23, %v166_v22  ;;  %v169_v29 = vld [vmem:[#allocation8 + $0x48] sm:$0xff]  ;;  %v1067_v30 = vpack.c.bf16 %v185_v27, %v184_v26  ;;  %v186_v32 = vld [vmem:[#allocation9 + $0x50] sm:$0xff]  ;;  %v187_v33 = vld [vmem:[#allocation9 + $0x58] sm:$0xff] }
  0x97   :  { %1059 = vmatpush3.bf16.msra.mxu0 %v1058_v12  ;;  %v1091_v31 = vpack.c.bf16 %v169_v29, %v168_v28  ;;  %v170_v34 = vld [vmem:[#allocation8 + $0x50] sm:$0xff]  ;;  %v171_v35 = vld [vmem:[#allocation8 + $0x58] sm:$0xff]  ;;  %v1070_v36 = vpack.c.bf16 %v187_v33, %v186_v32  ;;  %v188_v38 = vld [vmem:[#allocation9 + $0x60] sm:$0xff] }
  0x98   :  { %1083 = vmatpush3.bf16.msra.mxu1 %v1082_v13  ;;  %1060 = vmatprep.subr.bf16.mxu0 %v1432_v0  ;;  %v1094_v37 = vpack.c.bf16 %v171_v35, %v170_v34  ;;  %v189_v39 = vld [vmem:[#allocation9 + $0x68] sm:$0xff]  ;;  %v172_v40 = vld [vmem:[#allocation8 + $0x60] sm:$0xff]  ;;  %v190_v44 = vld [vmem:[#allocation9 + $0x70] sm:$0xff] }
  0x99   :  { %1084 = vmatprep.subr.bf16.mxu1 %v1432_v0  ;;  %v173_v41 = vld [vmem:[#allocation8 + $0x68] sm:$0xff]  ;;  %v1073_v42 = vpack.c.bf16 %v189_v39, %v188_v38  ;;  %v191_v45 = vld [vmem:[#allocation9 + $0x78] sm:$0xff]  ;;  %v174_v46 = vld [vmem:[#allocation8 + $0x70] sm:$0xff] }
  0x9a   :  { %v1097_v43 = vpack.c.bf16 %v173_v41, %v172_v40  ;;  %v175_v47 = vld [vmem:[#allocation8 + $0x78] sm:$0xff]  ;;  %v1076_v48 = vpack.c.bf16 %v191_v45, %v190_v44  ;;  %v156_v51 = vld [vmem:[#allocation3] sm:$0xff]  ;;  %v341_v52 = vld [vmem:[#allocation11] sm:$0xff] }
  0x9b   :  { %1062 = vmatpush3.bf16.msra.mxu0 %v1061_v18  ;;  %v154_v49 = vld [vmem:[#allocation6] sm:$0xff]  ;;  %v1100_v50 = vpack.c.bf16 %v175_v47, %v174_v46  ;;  %v342_v53 = vld [vmem:[#allocation11 + $0x8] sm:$0xff]  ;;  %v157_v55 = vmax.f32 %v156_v51, 0.0  ;;  %v343_v57 = vld [vmem:[#allocation11 + $0x10] sm:$0xff] }
  0x9c   :  { %1086 = vmatpush3.bf16.msra.mxu1 %v1085_v19  ;;  %1063 = vmatprep.subr.bf16.mxu0 %v1432_v0  ;;  %v159_v54 = vmax.f32 %v154_v49, 0.0  ;;  %v1103_v56 = vpack.c.bf16 %v342_v53, %v341_v52  ;;  %v344_v58 = vld [vmem:[#allocation11 + $0x18] sm:$0xff]  ;;  %v345_v60 = vld [vmem:[#allocation11 + $0x20] sm:$0xff]  ;;  %v346_v61 = vld [vmem:[#allocation11 + $0x28] sm:$0xff] }
  0x9d   :  { %1087 = vmatprep.subr.bf16.mxu1 %v1432_v0  ;;  %v1106_v59 = vpack.c.bf16 %v344_v58, %v343_v57  ;;  %v1109_v62 = vpack.c.bf16 %v346_v61, %v345_v60  ;;  %v347_v63 = vld [vmem:[#allocation11 + $0x30] sm:$0xff]  ;;  %v348_v2 = vld [vmem:[#allocation11 + $0x38] sm:$0xff]  ;;  %v349_v4 = vld [vmem:[#allocation11 + $0x40] sm:$0xff] }
  0x9e   :  { %v1112_v3 = vpack.c.bf16 %v348_v2, %v347_v63  ;;  %v350_v5 = vld [vmem:[#allocation11 + $0x48] sm:$0xff]  ;;  %v351_v7 = vld [vmem:[#allocation11 + $0x50] sm:$0xff]  ;;  %v352_v8 = vld [vmem:[#allocation11 + $0x58] sm:$0xff] }
  0x9f   :  { %1065 = vmatpush3.bf16.msra.mxu0 %v1064_v24  ;;  %v1115_v6 = vpack.c.bf16 %v350_v5, %v349_v4  ;;  %v1118_v9 = vpack.c.bf16 %v352_v8, %v351_v7  ;;  %v353_v10 = vld [vmem:[#allocation11 + $0x60] sm:$0xff]  ;;  %v354_v11 = vld [vmem:[#allocation11 + $0x68] sm:$0xff]  ;;  %v355_v13 = vld [vmem:[#allocation11 + $0x70] sm:$0xff] }
  0xa0   :  { %1089 = vmatpush3.bf16.msra.mxu1 %v1088_v25  ;;  %1066 = vmatprep.subr.bf16.mxu0 %v1432_v0  ;;  %v1121_v12 = vpack.c.bf16 %v354_v11, %v353_v10  ;;  %v356_v14 = vld [vmem:[#allocation11 + $0x78] sm:$0xff]  ;;  %v435_v16 = vld [vmem:[#allocation12] sm:$0xff]  ;;  %v436_v17 = vld [vmem:[#allocation12 + $0x8] sm:$0xff] }
  0xa1   :  { %1090 = vmatprep.subr.bf16.mxu1 %v1432_v0  ;;  %v1124_v15 = vpack.c.bf16 %v356_v14, %v355_v13  ;;  %v437_v18 = vld [vmem:[#allocation12 + $0x10] sm:$0xff]  ;;  %v1127_v19 = vpack.c.bf16 %v436_v17, %v435_v16  ;;  %v438_v20 = vld [vmem:[#allocation12 + $0x18] sm:$0xff]  ;;  %v439_v22 = vld [vmem:[#allocation12 + $0x20] sm:$0xff] }
  0xa2   :  { %v1130_v21 = vpack.c.bf16 %v438_v20, %v437_v18  ;;  %v440_v23 = vld [vmem:[#allocation12 + $0x28] sm:$0xff]  ;;  %v441_v25 = vld [vmem:[#allocation12 + $0x30] sm:$0xff]  ;;  %v442_v26 = vld [vmem:[#allocation12 + $0x38] sm:$0xff] }
  0xa3   :  { %1068 = vmatpush3.bf16.msra.mxu0 %v1067_v30  ;;  %v1133_v24 = vpack.c.bf16 %v440_v23, %v439_v22  ;;  %v1136_v27 = vpack.c.bf16 %v442_v26, %v441_v25  ;;  %v443_v28 = vld [vmem:[#allocation12 + $0x40] sm:$0xff]  ;;  %v444_v29 = vld [vmem:[#allocation12 + $0x48] sm:$0xff]  ;;  %v446_v32 = vld [vmem:[#allocation12 + $0x58] sm:$0xff] }
  0xa4   :  { %1092 = vmatpush3.bf16.msra.mxu1 %v1091_v31  ;;  %1069 = vmatprep.subr.bf16.mxu0 %v1432_v0  ;;  %v1139_v30 = vpack.c.bf16 %v444_v29, %v443_v28  ;;  %v445_v31 = vld [vmem:[#allocation12 + $0x50] sm:$0xff]  ;;  %v447_v34 = vld [vmem:[#allocation12 + $0x60] sm:$0xff]  ;;  %v448_v35 = vld [vmem:[#allocation12 + $0x68] sm:$0xff] }
  0xa5   :  { %1093 = vmatprep.subr.bf16.mxu1 %v1432_v0  ;;  %v1142_v33 = vpack.c.bf16 %v446_v32, %v445_v31  ;;  %v737_v39 = vld [vmem:[%s1711_s4] ss:$0 sm:$0xff]  ;;  %v529_v44 = vld [vmem:[#allocation14 + $0x8] sm:$0xff]  ;;  %v531_v49 = vld [vmem:[#allocation14 + $0x18] sm:$0xff] }
  0xa6   :  { %v532_v51 = vld [vmem:[#allocation14 + $0x20] sm:$0xff]  ;;  %v533_v52 = vld [vmem:[#allocation14 + $0x28] sm:$0xff]  ;;  %v538_v60 = vld [vmem:[#allocation14 + $0x50] sm:$0xff] }
  0xa7   :  { %1071 = vmatpush3.bf16.msra.mxu0 %v1070_v36  ;;  %v1145_v36 = vpack.c.bf16 %v448_v35, %v447_v34  ;;  %v1157_v53 = vpack.c.bf16 %v533_v52, %v532_v51  ;;  %v536_v57 = vld [vmem:[#allocation14 + $0x40] sm:$0xff]  ;;  %v537_v58 = vld [vmem:[#allocation14 + $0x48] sm:$0xff]  ;;  %v539_v61 = vld [vmem:[#allocation14 + $0x58] sm:$0xff] }
  0xa8   :  { %1095 = vmatpush3.bf16.msra.mxu1 %v1094_v37  ;;  %1072 = vmatprep.subr.bf16.mxu0 %v1432_v0  ;;  %v540_v63 = vld [vmem:[#allocation14 + $0x60] sm:$0xff]  ;;  %v541_v2 = vld [vmem:[#allocation14 + $0x68] sm:$0xff]  ;;  %v542_v4 = vld [vmem:[#allocation14 + $0x70] sm:$0xff] }
  0xa9   :  { %1096 = vmatprep.subr.bf16.mxu1 %v1432_v0  ;;  %v543_v5 = vld [vmem:[#allocation14 + $0x78] sm:$0xff]  ;;  %v449_v7 = vld [vmem:[#allocation12 + $0x70] sm:$0xff]  ;;  %v622_v11 = vld [vmem:[#allocation15] sm:$0xff] }
  0xaa   :  { %v450_v8 = vld [vmem:[#allocation12 + $0x78] sm:$0xff]  ;;  %v738_v10 = vld [vmem:[%s1713_s6] ss:$0 sm:$0xff]  ;;  %v627_v22 = vld [vmem:[#allocation15 + $0x28] sm:$0xff] }
  0xab   :  { %1074 = vmatpush3.bf16.msra.mxu0 %v1073_v42  ;;  %v624_v18 = vld [vmem:[#allocation15 + $0x10] sm:$0xff]  ;;  %v629_v25 = vld [vmem:[#allocation15 + $0x38] sm:$0xff]  ;;  %v631_v28 = vld [vmem:[#allocation15 + $0x48] sm:$0xff] }
  0xac   :  { %1098 = vmatpush3.bf16.msra.mxu1 %v1097_v43  ;;  %1075 = vmatprep.subr.bf16.mxu0 %v1432_v0  ;;  %v528_v43 = vld [vmem:[#allocation14] sm:$0xff]  ;;  %v636_v35 = vld [vmem:[#allocation15 + $0x70] sm:$0xff] }
  0xad   :  { %1099 = vmatprep.subr.bf16.mxu1 %v1432_v0  ;;  %v1151_v46 = vpack.c.bf16 %v529_v44, %v528_v43  ;;  %v634_v32 = vld [vmem:[#allocation15 + $0x60] sm:$0xff]  ;;  %v739_v43 = vld [vmem:[%s1715_s8] ss:$0 sm:$0xff] }
  0xaf   :  { %1077 = vmatpush3.bf16.msra.mxu0 %v1076_v48  ;;  %v530_v48 = vld [vmem:[#allocation14 + $0x10] sm:$0xff] }
  0xb0   :  { %1101 = vmatpush3.bf16.msra.mxu1 %v1100_v50  ;;  %1102 = vmatprep.subr.bf16.mxu0 %v1432_v0  ;;  %v1154_v50 = vpack.c.bf16 %v531_v49, %v530_v48 }
  0xb1   :  { %1126 = vmatprep.subr.bf16.mxu1 %v1432_v0 }
  0xb2   :  { %877 = vmatmul.mubr.f32.vlgmr.msra.gmra.mrb[0].mxu0 %v159_v54  ;;  %v534_v54 = vld [vmem:[#allocation14 + $0x30] sm:$0xff] }
  0xb3   :  { %912 = vmatmul.mubr.f32.vlgmr.msra.gmra.mrb[0].mxu1 %v157_v55  ;;  %1104 = vmatpush3.bf16.msra.mxu0 %v1103_v56  ;;  %v535_v55 = vld [vmem:[#allocation14 + $0x38] sm:$0xff] }
  0xb4   :  { %1105 = vmatprep.subr.bf16.mxu0 %v1432_v0  ;;  %946 = vmatprep.mubr.msk.f32.mxu0 %vm1433_vm0, %v1434_v1  ;;  %v1160_v56 = vpack.c.bf16 %v535_v55, %v534_v54 }
  0xb5   :  { %981 = vmatprep.mubr.msk.f32.mxu1 %vm1433_vm0, %v1434_v1  ;;  %1128 = vmatpush3.bf16.msra.mxu1 %v1127_v19  ;;  %v625_v19 = vld [vmem:[#allocation15 + $0x18] sm:$0xff] }
  0xb6   :  { %1129 = vmatprep.subr.bf16.mxu1 %v1432_v0  ;;  %v1178_v20 = vpack.c.bf16 %v625_v19, %v624_v18 }
  0xb7   :  { %1107 = vmatpush3.bf16.msra.mxu0 %v1106_v59  ;;  %v1163_v59 = vpack.c.bf16 %v537_v58, %v536_v57 }
  0xb8   :  { %1108 = vmatprep.subr.bf16.mxu0 %v1432_v0 }
  0xb9   :  { %1131 = vmatpush3.bf16.msra.mxu1 %v1130_v21  ;;  %v626_v21 = vld [vmem:[#allocation15 + $0x20] sm:$0xff] }
  0xba   :  { %1132 = vmatprep.subr.bf16.mxu1 %v1432_v0  ;;  %v1181_v23 = vpack.c.bf16 %v627_v22, %v626_v21 }
  0xbb   :  { %1110 = vmatpush3.bf16.msra.mxu0 %v1109_v62  ;;  %v1166_v62 = vpack.c.bf16 %v539_v61, %v538_v60 }
  0xbc   :  { %1111 = vmatprep.subr.bf16.mxu0 %v1432_v0 }
  0xbd   :  { %1134 = vmatpush3.bf16.msra.mxu1 %v1133_v24  ;;  %v628_v24 = vld [vmem:[#allocation15 + $0x30] sm:$0xff] }
  0xbe   :  { %1135 = vmatprep.subr.bf16.mxu1 %v1432_v0  ;;  %v1184_v26 = vpack.c.bf16 %v629_v25, %v628_v24 }
  0xbf   :  { %1113 = vmatpush3.bf16.msra.mxu0 %v1112_v3  ;;  %v1169_v3 = vpack.c.bf16 %v541_v2, %v540_v63 }
  0xc0   :  { %1114 = vmatprep.subr.bf16.mxu0 %v1432_v0 }
  0xc1   :  { %1137 = vmatpush3.bf16.msra.mxu1 %v1136_v27  ;;  %v630_v27 = vld [vmem:[#allocation15 + $0x40] sm:$0xff] }
  0xc2   :  { %1138 = vmatprep.subr.bf16.mxu1 %v1432_v0  ;;  %v1187_v29 = vpack.c.bf16 %v631_v28, %v630_v27 }
  0xc3   :  { %1116 = vmatpush3.bf16.msra.mxu0 %v1115_v6  ;;  %v1172_v6 = vpack.c.bf16 %v543_v5, %v542_v4 }
  0xc4   :  { %1117 = vmatprep.subr.bf16.mxu0 %v1432_v0 }
  0xc5   :  { %1140 = vmatpush3.bf16.msra.mxu1 %v1139_v30  ;;  %v633_v30 = vld [vmem:[#allocation15 + $0x58] sm:$0xff] }
  0xc6   :  { %1141 = vmatprep.subr.bf16.mxu1 %v1432_v0 }
  0xc7   :  { %1119 = vmatpush3.bf16.msra.mxu0 %v1118_v9  ;;  %v1148_v9 = vpack.c.bf16 %v450_v8, %v449_v7 }
  0xc8   :  { %1120 = vmatprep.subr.bf16.mxu0 %v1432_v0 }
  0xc9   :  { %1143 = vmatpush3.bf16.msra.mxu1 %v1142_v33  ;;  %v635_v33 = vld [vmem:[#allocation15 + $0x68] sm:$0xff] }
  0xca   :  { %1144 = vmatprep.subr.bf16.mxu1 %v1432_v0  ;;  %v1193_v34 = vpack.c.bf16 %v635_v33, %v634_v32 }
  0xcb   :  { %1122 = vmatpush3.bf16.msra.mxu0 %v1121_v12  ;;  %v623_v12 = vld [vmem:[#allocation15 + $0x8] sm:$0xff] }
  0xcc   :  { %1123 = vmatprep.subr.bf16.mxu0 %v1432_v0  ;;  %v1175_v16 = vpack.c.bf16 %v623_v12, %v622_v11 }
  0xcd   :  { %1146 = vmatpush3.bf16.msra.mxu1 %v1145_v36  ;;  %v637_v36 = vld [vmem:[#allocation15 + $0x78] sm:$0xff] }
  0xce   :  { %1147 = vmatprep.subr.bf16.mxu1 %v1432_v0 }
  0xcf   :  { %1125 = vmatpush3.bf16.msra.mxu0 %v1124_v15 }
  0xd0   :  { %1150 = vmatprep.subr.bf16.mxu0 %v1432_v0 }
  0xd1   :  { %1149 = vmatpush3.bf16.msra.mxu1 %v1148_v9 }
  0xd2   :  { %1174 = vmatprep.subr.bf16.mxu1 %v1432_v0 }
 0x185   :  { %v258_v37 = vpop.f32.mrb[0].mxu0 }
 0x186   :  { %v328_v38 = vpop.f32.mrb[0].mxu1  ;;  %v878_v40 = vpop.f32.mrb[1].mxu0 }
 0x187   :  { %v329_v41 = vadd.f32 %v328_v38, %v258_v37  ;;  %v913_v42 = vpop.f32.mrb[1].mxu1  ;;  %v740_v37 = vld [vmem:[%s1717_s10] ss:$0 sm:$0xff]  ;;  %v1196_v38 = vpack.c.bf16 %v637_v36, %v636_v35  ;;  %s1435_s10 = smov [#allocation17]  }
 0x188   :  { %s724_s30 = sshll.u32 %s1435_s10, 4  ;;  %s725_s30 = int_to_ptr.vmem [resolvable:$true] %s724_s30 }
 0x189   :  { %v339_v45 = vadd.f32 %v737_v39, %v329_v41  ;;  %s1388_s18 = scalar_lea.vmem %s725_s30, 256  ;;  %p1393_p9 = scmp.lt.s32.totalorder %s725_s30, %s725_s30 }
 0x18a   :  { %p1389_p8 = scmp.ne.s32.totalorder %s725_s30, %s1388_s18  ;;  %p1394_p10 = scmp.lt.s32.totalorder %s1388_s18, %s1388_s18 }
 0x18b   :  { %v340_v47 = vmax.f32 %v339_v45, 0.0 }
 0x18c   :  { %p1395_p11 = por %p1394_p10, %p1393_p9 }
 0x18d   :  { %947 = vmatmul.mubr.f32.vlgmr.msra.gmra.mrb[2].mxu0 %v340_v47 }
 0x18e   :  { %1152 = vmatpush3.bf16.msra.mxu0 %v1151_v46  ;;  %1016 = vmatprep.mubr.msk.f32.mxu0 %vm1433_vm0, %v1434_v1  ;;  %p1396_p12 = pnand %p1395_p11, %p1389_p8 }
 0x18f   :  { %1153 = vmatprep.subr.bf16.mxu0 %v1432_v0 }
 0x192   :  { %1155 = vmatpush3.bf16.msra.mxu0 %v1154_v50 }
 0x193   :  { %1156 = vmatprep.subr.bf16.mxu0 %v1432_v0 }
 0x196   :  { %1158 = vmatpush3.bf16.msra.mxu0 %v1157_v53 }
 0x197   :  { %1159 = vmatprep.subr.bf16.mxu0 %v1432_v0 }
 0x19a   :  { %1161 = vmatpush3.bf16.msra.mxu0 %v1160_v56 }
 0x19b   :  { %1162 = vmatprep.subr.bf16.mxu0 %v1432_v0 }
 0x19e   :  { %1164 = vmatpush3.bf16.msra.mxu0 %v1163_v59 }
 0x19f   :  { %1165 = vmatprep.subr.bf16.mxu0 %v1432_v0 }
 0x1a2   :  { %1167 = vmatpush3.bf16.msra.mxu0 %v1166_v62 }
 0x1a3   :  { %1168 = vmatprep.subr.bf16.mxu0 %v1432_v0 }
 0x1a6   :  { %1170 = vmatpush3.bf16.msra.mxu0 %v1169_v3 }
 0x1a7   :  { %1171 = vmatprep.subr.bf16.mxu0 %v1432_v0 }
 0x1aa   :  { %1173 = vmatpush3.bf16.msra.mxu0 %v1172_v6 }
 0x1ad   :  { %1017 = vmatmul.mubr.f32.vlgmr.msra.gmra.mrb[4].mxu0 %v340_v47  ;;  %v741_v47 = vld [vmem:[%s1719_s12] ss:$0 sm:$0xff] }
 0x260   :  { %v430_v13 = vpop.f32.mrb[2].mxu0 }
 0x261   :  { %v431_v14 = vadd.f32 %v738_v10, %v430_v13  ;;  %v948_v15 = vpop.f32.mrb[3].mxu0 }
 0x263   :  { %v434_v17 = vmax.f32 %v431_v14, 0.0 }
 0x265   :  { %982 = vmatmul.mubr.f32.vlgmr.msra.gmra.mrb[2].mxu1 %v434_v17 }
 0x266   :  { %1176 = vmatpush3.bf16.msra.mxu1 %v1175_v16  ;;  %1051 = vmatprep.mubr.msk.f32.mxu1 %vm1433_vm0, %v1434_v1  ;;  %v632_v1 = vld [vmem:[#allocation15 + $0x50] sm:$0xff] }
 0x267   :  { %1177 = vmatprep.subr.bf16.mxu1 %v1432_v0  ;;  %v1190_v31 = vpack.c.bf16 %v633_v30, %v632_v1 }
 0x26a   :  { %1179 = vmatpush3.bf16.msra.mxu1 %v1178_v20 }
 0x26b   :  { %1180 = vmatprep.subr.bf16.mxu1 %v1432_v0 }
 0x26e   :  { %1182 = vmatpush3.bf16.msra.mxu1 %v1181_v23 }
 0x26f   :  { %1183 = vmatprep.subr.bf16.mxu1 %v1432_v0 }
 0x272   :  { %1185 = vmatpush3.bf16.msra.mxu1 %v1184_v26 }
 0x273   :  { %1186 = vmatprep.subr.bf16.mxu1 %v1432_v0 }
 0x276   :  { %1188 = vmatpush3.bf16.msra.mxu1 %v1187_v29 }
 0x277   :  { %1189 = vmatprep.subr.bf16.mxu1 %v1432_v0 }
 0x27a   :  { %1191 = vmatpush3.bf16.msra.mxu1 %v1190_v31 }
 0x27b   :  { %1192 = vmatprep.subr.bf16.mxu1 %v1432_v0 }
 0x27e   :  { %1194 = vmatpush3.bf16.msra.mxu1 %v1193_v34 }
 0x27f   :  { %1195 = vmatprep.subr.bf16.mxu1 %v1432_v0 }
 0x280   :  { %v617_v39 = vpop.f32.mrb[4].mxu0 }
 0x281   :  { %v618_v40 = vadd.f32 %v740_v37, %v617_v39  ;;  %v1018_v41 = vpop.f32.mrb[5].mxu0 }
 0x282   :  { %1197 = vmatpush3.bf16.msra.mxu1 %v1196_v38 }
 0x283   :  { %v621_v42 = vmax.f32 %v618_v40, 0.0 }
 0x285   :  { %1052 = vmatmul.mubr.f32.vlgmr.msra.gmra.mrb[4].mxu1 %v621_v42 }
 0x338   :  { %v524_v44 = vpop.f32.mrb[2].mxu1 }
 0x339   :  { %v525_v45 = vadd.f32 %v739_v43, %v524_v44  ;;  %v983_v46 = vpop.f32.mrb[3].mxu1 }
 0x33b   :  { %717 = vst [vmem:[#allocation17 + $0x8] sm:$0xff] %v525_v45 }
 0x358   :  { %v711_v0 = vpop.f32.mrb[4].mxu1 }
 0x359   :  { %v712_v48 = vadd.f32 %v741_v47, %v711_v0  ;;  %v1053_v49 = vpop.f32.mrb[5].mxu1 }
 0x35b   :  { %716 = vst [vmem:[#allocation17] sm:$0xff] %v712_v48 }
 0x35c   :  { %1399 = shalt.err (!%p1396_p12)
}
 0x35d   :  { %s1400_s5 = scalar_lea.hbm %s1720_s13, 256 }
 0x35e   :  { %p1401_p13 = scmp.ne.s32.totalorder %s1720_s13, %s1400_s5  ;;  %p1404_p0 = scmp.lt.u32.totalorder %s1400_s5, %s1720_s13 }
 0x360   :  { %p1406_p1 = pnand %p1404_p0, %p1401_p13 }
 0x362   :  { %1409 = shalt.err (!%p1406_p1)
}
 0x363   :  { %727 = dma.vmem_to_hbm [thread:$0]  %s725_s30, 256, %s1720_s13, [#allocation5]  }
 0x364   :  { %1420 = dma.done.wait [#allocation5], 256  }
 0x365   :  { %1421 = vsyncadd [#allocation5], 4294967040 }
 0x366   :  { %731 = vsyncpa [#allocation4], 1 }
 0x367   :  { %732 = vsyncpa [#allocation7], 1 }
 0x368   :  { %733 = vsyncpa [#allocation10], 1 }
 0x369   :  { %734 = vsyncpa [#allocation13], 1 }
 0x36a   :  { %735 = vsyncpa [#allocation16], 1 }
 0x36b   :  { %736 = vsyncpa [#allocation5], 1 }

</bundles_post_ra>
